<compile_context>
chip_gen: v7x
topology: tpu7x:2x2x1
jax: 0.10.0
libtpu: 0.0.40
codegen_flags: <defaults>
</compile_context>

<pallas_src>
import functools

import jax
import jax.numpy as jnp
import numpy as np
from jax.experimental import pallas as pl
from jax.experimental.pallas import tpu as pltpu


# ----------------------------- Pallas kernel ------------------------------- #

def _ln_channel_kernel(x_ref, g_ref, b_ref, o_ref, *, eps, num_channels):
    # x_ref: (bn, C, bhw) VMEM tile in the input's native dtype.
    x = x_ref[...].astype(jnp.float32)                # in-kernel upcast (no wrapper pass)
    u = jnp.mean(x, axis=1, keepdims=True)            # channel mean (sublane reduce)
    xc = x - u
    s = jnp.mean(xc * xc, axis=1, keepdims=True)      # biased variance
    xn = xc * jax.lax.rsqrt(s + eps)                  # rsqrt -> EUP, mul -> VPU

    # Splat the C SMEM scalars into a (1, C, 1) vector once per invocation.
    # num_channels is static, so this loop is fully unrolled at trace time.
    ch = jax.lax.broadcasted_iota(jnp.int32, (1, num_channels, 1), 1)
    gamma = jnp.zeros((1, num_channels, 1), jnp.float32)
    beta = jnp.zeros((1, num_channels, 1), jnp.float32)
    for c in range(num_channels):
        gamma = jnp.where(ch == c, g_ref[c], gamma)
        beta = jnp.where(ch == c, b_ref[c], beta)

    o_ref[...] = (gamma * xn + beta).astype(o_ref.dtype)


# ------------------------------- wrapper ----------------------------------- #

def layer_norm_channel(x_nchw, weight, bias, eps=1e-5):
    """LayerNormChannel: normalize over the channel dim of an NCHW tensor."""
    N, C, H, W = x_nchw.shape
    HW = H * W

    # Lane-dense layout (spatial axis last); reshape is metadata-only.
    x3 = x_nchw.reshape(N, C, HW)                      # native dtype, no cast pass
    g = weight.astype(jnp.float32)                     # C scalars -> SMEM
    b = bias.astype(jnp.float32)

    itemsize = jnp.dtype(x_nchw.dtype).itemsize
    block_budget = 2 * 1024 * 1024                     # bytes per input block

    if N * C * HW * itemsize <= block_budget or HW % 128 != 0:
        # Small tensor (or unaligned HW): one block covering the full array.
        # Last block dim == full array dim is legal even when HW % 128 != 0,
        # so no pad/slice HBM passes are needed.
        bn, bhw = N, HW
    else:
        # Production shapes: tile HW in multiples of 128 so double-buffered
        # in+out blocks stay well inside VMEM on all generations (incl. v7x).
        bn = 1
        bhw = HW
        while (C * bhw * itemsize > block_budget
               and bhw % 2 == 0 and (bhw // 2) % 128 == 0):
            bhw //= 2

    grid = (N // bn, HW // bhw)
    # Only ask for megacore sharding when there is actually >1 step of work.
    multi_step = grid[0] * grid[1] > 1
    semantics = ("parallel", "parallel") if multi_step else ("arbitrary", "arbitrary")

    out = pl.pallas_call(
        functools.partial(_ln_channel_kernel, eps=eps, num_channels=C),
        out_shape=jax.ShapeDtypeStruct((N, C, HW), x_nchw.dtype),
        grid=grid,
        in_specs=[
            pl.BlockSpec((bn, C, bhw), lambda i, j: (i, 0, j)),
            pl.BlockSpec(memory_space=pltpu.MemorySpace.SMEM),   # weight (C,)
            pl.BlockSpec(memory_space=pltpu.MemorySpace.SMEM),   # bias   (C,)
        ],
        out_specs=pl.BlockSpec((bn, C, bhw), lambda i, j: (i, 0, j)),
        compiler_params=pltpu.CompilerParams(
            dimension_semantics=semantics,
            vmem_limit_bytes=32 * 1024 * 1024,
        ),
    )(x3, g, b)

    return out.reshape(N, C, H, W)


# ---------------------------- reference (checking) -------------------------- #

def _ref_layer_norm_channel(x, w, b, eps=1e-5):
    u = x.mean(1, keepdims=True)
    s = ((x - u) ** 2).mean(1, keepdims=True)
    xn = (x - u) / jnp.sqrt(s + eps)
    return w[None, :, None, None] * xn + b[None, :, None, None]


# ----------------------------------- main ----------------------------------- #

if __name__ == "__main__":
    key = jax.random.PRNGKey(0)
    kx, kw, kb = jax.random.split(key, 3)

    # Module-consistent small shapes: batch=2, channels=4, spatial=16x16.
    x = jax.random.normal(kx, (2, 4, 16, 16), jnp.float32)
    # Non-trivial affine params to exercise the scale/shift path.
    weight = 1.0 + 0.1 * jax.random.normal(kw, (4,), jnp.float32)
    bias = 0.1 * jax.random.normal(kb, (4,), jnp.float32)

    fwd = jax.jit(layer_norm_channel)
    out = jax.block_until_ready(fwd(x, weight, bias))
    assert out.shape == (2, 4, 16, 16), out.shape
    assert out.dtype == x.dtype, out.dtype

    ref = jax.block_until_ready(_ref_layer_norm_channel(x, weight, bias))
    np.testing.assert_allclose(np.asarray(out), np.asarray(ref),
                               rtol=1e-5, atol=1e-5)

    print("KERNEL_OK")
</pallas_src>

<mosaic_0001>
module attributes {stable_mosaic.version = 11 : i64} {
  func.func @_ln_channel_kernel(%arg0: i32, %arg1: i32, %arg2: memref<2x4x256xf32, #tpu.memory_space<vmem>>, %arg3: memref<4xf32, #tpu.memory_space<smem>>, %arg4: memref<4xf32, #tpu.memory_space<smem>>, %arg5: memref<2x4x256xf32, #tpu.memory_space<vmem>>) attributes {dimension_semantics = [#tpu.dimension_semantics<arbitrary>, #tpu.dimension_semantics<arbitrary>], iteration_bounds = array<i64: 1, 1>, scalar_prefetch = 0 : i64, scratch_operands = 0 : i64, tpu.core_type = #tpu.core_type<tc>, window_params = [{transform_indices = @transform_0, window_bounds = array<i64: 2, 4, 256>}, {transform_indices = @transform_1, window_bounds = array<i64: 4>}, {transform_indices = @transform_2, window_bounds = array<i64: 4>}, {transform_indices = @transform_3, window_bounds = array<i64: 2, 4, 256>}]} {
    %c0 = arith.constant 0 : index
    %c0_0 = arith.constant 0 : index
    %c0_1 = arith.constant 0 : index
    %0 = vector.load %arg2[%c0, %c0_0, %c0_1] : memref<2x4x256xf32, #tpu.memory_space<vmem>>, vector<2x4x256xf32>
    %cst = arith.constant dense<0.000000e+00> : vector<2x256xf32>
    %1 = vector.multi_reduction <add>, %0, %cst [1] : vector<2x4x256xf32> to vector<2x256xf32>
    %2 = vector.shape_cast %1 : vector<2x256xf32> to vector<2x1x256xf32>
    %cst_2 = arith.constant 4.000000e+00 : f32
    %3 = vector.broadcast %cst_2 : f32 to vector<2x1x256xf32>
    %4 = arith.divf %2, %3 : vector<2x1x256xf32>
    %5 = vector.broadcast %4 : vector<2x1x256xf32> to vector<2x4x256xf32>
    %6 = arith.subf %0, %5 : vector<2x4x256xf32>
    %7 = arith.mulf %6, %6 : vector<2x4x256xf32>
    %cst_3 = arith.constant dense<0.000000e+00> : vector<2x256xf32>
    %8 = vector.multi_reduction <add>, %7, %cst_3 [1] : vector<2x4x256xf32> to vector<2x256xf32>
    %9 = vector.shape_cast %8 : vector<2x256xf32> to vector<2x1x256xf32>
    %cst_4 = arith.constant 4.000000e+00 : f32
    %10 = vector.broadcast %cst_4 : f32 to vector<2x1x256xf32>
    %11 = arith.divf %9, %10 : vector<2x1x256xf32>
    %cst_5 = arith.constant 9.99999974E-6 : f32
    %12 = vector.broadcast %cst_5 : f32 to vector<2x1x256xf32>
    %13 = arith.addf %11, %12 : vector<2x1x256xf32>
    %14 = math.rsqrt %13 : vector<2x1x256xf32>
    %15 = vector.broadcast %14 : vector<2x1x256xf32> to vector<2x4x256xf32>
    %16 = arith.mulf %6, %15 : vector<2x4x256xf32>
    %17 = tpu.iota {dimensions = array<i32: 1>} : vector<1x4x1xi32>
    %cst_6 = arith.constant 0.000000e+00 : f32
    %18 = vector.broadcast %cst_6 : f32 to vector<1x4x1xf32>
    %cst_7 = arith.constant 0.000000e+00 : f32
    %19 = vector.broadcast %cst_7 : f32 to vector<1x4x1xf32>
    %c0_i32 = arith.constant 0 : i32
    %20 = vector.broadcast %c0_i32 : i32 to vector<1x4x1xi32>
    %21 = arith.cmpi eq, %17, %20 : vector<1x4x1xi32>
    %c0_8 = arith.constant 0 : index
    %22 = memref.load %arg3[%c0_8] : memref<4xf32, #tpu.memory_space<smem>>
    %23 = vector.broadcast %22 : f32 to vector<1x4x1xf32>
    %24 = arith.select %21, %23, %18 : vector<1x4x1xi1>, vector<1x4x1xf32>
    %c0_i32_9 = arith.constant 0 : i32
    %25 = vector.broadcast %c0_i32_9 : i32 to vector<1x4x1xi32>
    %26 = arith.cmpi eq, %17, %25 : vector<1x4x1xi32>
    %c0_10 = arith.constant 0 : index
    %27 = memref.load %arg4[%c0_10] : memref<4xf32, #tpu.memory_space<smem>>
    %28 = vector.broadcast %27 : f32 to vector<1x4x1xf32>
    %29 = arith.select %26, %28, %19 : vector<1x4x1xi1>, vector<1x4x1xf32>
    %c1_i32 = arith.constant 1 : i32
    %30 = vector.broadcast %c1_i32 : i32 to vector<1x4x1xi32>
    %31 = arith.cmpi eq, %17, %30 : vector<1x4x1xi32>
    %c1 = arith.constant 1 : index
    %32 = memref.load %arg3[%c1] : memref<4xf32, #tpu.memory_space<smem>>
    %33 = vector.broadcast %32 : f32 to vector<1x4x1xf32>
    %34 = arith.select %31, %33, %24 : vector<1x4x1xi1>, vector<1x4x1xf32>
    %c1_i32_11 = arith.constant 1 : i32
    %35 = vector.broadcast %c1_i32_11 : i32 to vector<1x4x1xi32>
    %36 = arith.cmpi eq, %17, %35 : vector<1x4x1xi32>
    %c1_12 = arith.constant 1 : index
    %37 = memref.load %arg4[%c1_12] : memref<4xf32, #tpu.memory_space<smem>>
    %38 = vector.broadcast %37 : f32 to vector<1x4x1xf32>
    %39 = arith.select %36, %38, %29 : vector<1x4x1xi1>, vector<1x4x1xf32>
    %c2_i32 = arith.constant 2 : i32
    %40 = vector.broadcast %c2_i32 : i32 to vector<1x4x1xi32>
    %41 = arith.cmpi eq, %17, %40 : vector<1x4x1xi32>
    %c2 = arith.constant 2 : index
    %42 = memref.load %arg3[%c2] : memref<4xf32, #tpu.memory_space<smem>>
    %43 = vector.broadcast %42 : f32 to vector<1x4x1xf32>
    %44 = arith.select %41, %43, %34 : vector<1x4x1xi1>, vector<1x4x1xf32>
    %c2_i32_13 = arith.constant 2 : i32
    %45 = vector.broadcast %c2_i32_13 : i32 to vector<1x4x1xi32>
    %46 = arith.cmpi eq, %17, %45 : vector<1x4x1xi32>
    %c2_14 = arith.constant 2 : index
    %47 = memref.load %arg4[%c2_14] : memref<4xf32, #tpu.memory_space<smem>>
    %48 = vector.broadcast %47 : f32 to vector<1x4x1xf32>
    %49 = arith.select %46, %48, %39 : vector<1x4x1xi1>, vector<1x4x1xf32>
    %c3_i32 = arith.constant 3 : i32
    %50 = vector.broadcast %c3_i32 : i32 to vector<1x4x1xi32>
    %51 = arith.cmpi eq, %17, %50 : vector<1x4x1xi32>
    %c3 = arith.constant 3 : index
    %52 = memref.load %arg3[%c3] : memref<4xf32, #tpu.memory_space<smem>>
    %53 = vector.broadcast %52 : f32 to vector<1x4x1xf32>
    %54 = arith.select %51, %53, %44 : vector<1x4x1xi1>, vector<1x4x1xf32>
    %c3_i32_15 = arith.constant 3 : i32
    %55 = vector.broadcast %c3_i32_15 : i32 to vector<1x4x1xi32>
    %56 = arith.cmpi eq, %17, %55 : vector<1x4x1xi32>
    %c3_16 = arith.constant 3 : index
    %57 = memref.load %arg4[%c3_16] : memref<4xf32, #tpu.memory_space<smem>>
    %58 = vector.broadcast %57 : f32 to vector<1x4x1xf32>
    %59 = arith.select %56, %58, %49 : vector<1x4x1xi1>, vector<1x4x1xf32>
    %60 = vector.broadcast %54 : vector<1x4x1xf32> to vector<2x4x256xf32>
    %61 = arith.mulf %60, %16 : vector<2x4x256xf32>
    %62 = vector.broadcast %59 : vector<1x4x1xf32> to vector<2x4x256xf32>
    %63 = arith.addf %61, %62 : vector<2x4x256xf32>
    %c0_17 = arith.constant 0 : index
    %c0_18 = arith.constant 0 : index
    %c0_19 = arith.constant 0 : index
    %64 = vector.load %arg5[%c0_17, %c0_18, %c0_19] : memref<2x4x256xf32, #tpu.memory_space<vmem>>, vector<2x4x256xf32>
    tpu.vector_store %arg5[%c0_17, %c0_18, %c0_19], %63 {strides = array<i32>} : memref<2x4x256xf32, #tpu.memory_space<vmem>>, vector<2x4x256xf32>,
    return
  }
  func.func @transform_0(%arg0: i32, %arg1: i32) -> (i32, i32, i32) {
    %c0_i32 = arith.constant 0 : i32
    %c0_i32_0 = arith.constant 0 : i32
    return %arg0, %c0_i32, %arg1 : i32, i32, i32
  }
  func.func @transform_1(%arg0: i32, %arg1: i32) -> i32 {
    %c0_i32 = arith.constant 0 : i32
    %c0_i32_0 = arith.constant 0 : i32
    return %c0_i32 : i32
  }
  func.func @transform_2(%arg0: i32, %arg1: i32) -> i32 {
    %c0_i32 = arith.constant 0 : i32
    %c0_i32_0 = arith.constant 0 : i32
    return %c0_i32 : i32
  }
  func.func @transform_3(%arg0: i32, %arg1: i32) -> (i32, i32, i32) {
    %c0_i32 = arith.constant 0 : i32
    %c0_i32_0 = arith.constant 0 : i32
    return %arg0, %c0_i32, %arg1 : i32, i32, i32
  }
}

</mosaic_0001>

<bundles_post_ra>
// kernel: layer_norm_channel.1
= control target key start
LH: loop header
LB: loop body
LE: loop exit
PB: predicated region body
PF: predicated region fallthrough
CT: control target
= control target key end

     0   :  { %8 = vsyncpa [#allocation3], 0  ;;  %s313_s0 = inlined_call_operand.vmem [shape: f32[2,4,256], index: 0, kind: input, shape index: {}]   ;;  %s314_s1 = inlined_call_operand.vmem [shape: f32[4], index: 1, kind: input, shape index: {}]   ;;  %s315_s2 = inlined_call_operand.vmem [shape: f32[4], index: 2, kind: input, shape index: {}]   ;;  %s316_s3 = inlined_call_operand.vmem [shape: f32[2,4,256], index: 3, kind: output, shape index: {}]  }
   0x1   :  { %s18_s14 = sshll.u32 %s314_s1, 4  ;;  %s19_s14 = int_to_ptr.vmem [resolvable:$true] %s18_s14 }
   0x2   :  { %9 = vsyncpa [#allocation5], 0  ;;  %s28_s17 = sshll.u32 %s315_s2, 4  ;;  %s227_s18 = scalar_lea.vmem %s19_s14, 16  ;;  %s29_s17 = int_to_ptr.vmem [resolvable:$true] %s28_s17 }
   0x3   :  { %p228_p0 = scmp.ne.s32.totalorder %s19_s14, %s227_s18  ;;  %p232_p1 = scmp.lt.s32.totalorder %s19_s14, %s19_s14 }
   0x4   :  { %p233_p2 = scmp.lt.s32.totalorder %s227_s18, %s227_s18 }
   0x6   :  { %p234_p3 = por %p233_p2, %p232_p1 }
   0x8   :  { %p235_p4 = pnand %p234_p3, %p228_p0 }
   0xa   :  { %238 = shalt.err (!%p235_p4)
}
   0xb   :  { %s255_s19 = smov [#allocation2]   ;;  %s239_s20 = scalar_lea.vmem %s29_s17, 16 }
   0xc   :  { %21 = dma.vmem_to_smem %s19_s14, 16, %s255_s19, [#allocation3]  }
   0xd   :  { %p240_p5 = scmp.ne.s32.totalorder %s29_s17, %s239_s20  ;;  %p244_p6 = scmp.lt.s32.totalorder %s29_s17, %s29_s17 }
   0xe   :  { %p245_p7 = scmp.lt.s32.totalorder %s239_s20, %s239_s20 }
  0x10   :  { %p246_p8 = por %p245_p7, %p244_p6 }
  0x12   :  { %p247_p9 = pnand %p246_p8, %p240_p5 }
  0x14   :  { %250 = shalt.err (!%p247_p9)
}
  0x15   :  { %s256_s1 = smov [#allocation4]  }
  0x16   :  { %31 = dma.vmem_to_smem %s29_s17, 16, %s256_s1, [#allocation5]  }
  0x17   :  { %251 = dma.done.wait [#allocation3], 16  }
  0x18   :  { %252 = vsyncadd [#allocation3], 4294967280 }
  0x19   :  { %253 = dma.done.wait [#allocation5], 16  }
  0x1a   :  { %254 = vsyncadd [#allocation5], 4294967280 }
  0x1b   :  { %38 = sfence }
  0x1c   :  { %v39_v0 = vld [vmem:[%s313_s0] sm:$0xff]  ;;  %v40_v1 = vld [vmem:[%s313_s0 + $0x8] sm:$0xff]  ;;  %vm47_vm0 = vcmask 1043456   ;;  %s152_s0 = sld [smem:[#allocation2]]  ;;  %s209_s25 = sld [smem:[#allocation2 + $0x1]] }
  0x1d   :  { %v43_v2 = vcombine.high %v39_v0, %v39_v0  ;;  %v44_v3 = vcombine.high %v40_v1, %v40_v1  ;;  %v48_v4 = vsel %vm47_vm0, %v39_v0, 0.0  ;;  %v62_v5 = vsel %vm47_vm0, %v40_v1, 0.0  ;;  %s155_s24 = sld [smem:[#allocation4]]  ;;  %s210_s26 = sld [smem:[#allocation4 + $0x1]] }
  0x1e   :  { %v49_v6 = vrot.slane %v48_v4, 4  ;;  %v63_v7 = vrot.slane %v62_v5, 4  ;;  %s211_s27 = sld [smem:[#allocation2 + $0x2]]  ;;  %s213_s29 = sld [smem:[#allocation2 + $0x3]] }
  0x1f   :  { %v55_v8 = vsel %vm47_vm0, %v43_v2, 0.0  ;;  %v69_v9 = vsel %vm47_vm0, %v44_v3, 0.0  ;;  %v149_v2 = vlaneseq  ;;  %s212_s28 = sld [smem:[#allocation4 + $0x2]]  ;;  %s214_s30 = sld [smem:[#allocation4 + $0x3]] }
  0x20   :  { %v50_v10 = vadd.f32 %v49_v6, %v48_v4  ;;  %v56_v11 = vrot.slane %v55_v8, 4  ;;  %v64_v12 = vadd.f32 %v63_v7, %v62_v5  ;;  %v70_v13 = vrot.slane %v69_v9, 4 }
  0x22   :  { %v51_v14 = vrot.slane %v50_v10, 2  ;;  %v57_v15 = vadd.f32 %v56_v11, %v55_v8  ;;  %v65_v16 = vrot.slane %v64_v12, 2  ;;  %v71_v17 = vadd.f32 %v70_v13, %v69_v9 }
  0x23   :  { %v150_v11 = vshrl.u32 %v149_v2, 7 }
  0x24   :  { %v52_v18 = vadd.f32 %v51_v14, %v50_v10  ;;  %v58_v19 = vrot.slane %v57_v15, 2  ;;  %v66_v20 = vadd.f32 %v65_v16, %v64_v12  ;;  %v72_v21 = vrot.slane %v71_v17, 2 }
  0x25   :  { %vm151_vm1 = vcmp.eq.s32.totalorder %v150_v11, 0  ;;  %vm158_vm2 = vcmp.eq.s32.totalorder %v150_v11, 1  ;;  %vm165_vm3 = vcmp.eq.s32.totalorder %v150_v11, 2  ;;  %vm172_vm4 = vcmp.eq.s32.totalorder %v150_v11, 3 }
  0x26   :  { %v53_v22 = vrot.slane %v52_v18, 1  ;;  %v59_v23 = vadd.f32 %v58_v19, %v57_v15  ;;  %v67_v24 = vrot.slane %v66_v20, 1  ;;  %v73_v25 = vadd.f32 %v72_v21, %v71_v17 }
  0x27   :  { %v156_v19 = vstv %s155_s24  ;;  %v160_v21 = vstv %s209_s25 }
  0x28   :  { %v54_v26 = vadd.f32 %v53_v22, %v52_v18  ;;  %v60_v27 = vrot.slane %v59_v23, 1  ;;  %v68_v28 = vadd.f32 %v67_v24, %v66_v20  ;;  %v74_v29 = vrot.slane %v73_v25, 1 }
  0x29   :  { %v153_v18 = vstv %s152_s0  ;;  %v157_v22 = vsel %vm151_vm1, %v156_v19, 0.0 }
  0x2a   :  { %v61_v30 = vadd.f32 %v60_v27, %v59_v23  ;;  %v75_v31 = vadd.f32 %v74_v29, %v73_v25  ;;  %v77_v32 = vmul.f32 0.25, %v54_v26  ;;  %v79_v33 = vmul.f32 0.25, %v68_v28 }
  0x2b   :  { %v154_v20 = vsel %vm151_vm1, %v153_v18, 0.0  ;;  %v163_v23 = vstv %s210_s26  ;;  %v167_v25 = vstv %s211_s27  ;;  %v170_v28 = vstv %s212_s28 }
  0x2c   :  { %v78_v34 = vmul.f32 0.25, %v61_v30  ;;  %v80_v35 = vmul.f32 0.25, %v75_v31  ;;  %v161_v24 = vsel %vm158_vm2, %v160_v21, %v154_v20  ;;  %v164_v27 = vsel %vm158_vm2, %v163_v23, %v157_v22 }
  0x2d   :  { %v168_v30 = vsel %vm165_vm3, %v167_v25, %v161_v24  ;;  %v174_v31 = vstv %s213_s29 }
  0x2e   :  { %v85_v36 = vcombine.low %v77_v32, %v78_v34  ;;  %v86_v37 = vcombine.low %v79_v33, %v80_v35  ;;  %v171_v35 = vsel %vm165_vm3, %v170_v28, %v164_v27 }
  0x30   :  { %v293_v38 = vsub.f32 %v39_v0, %v85_v36  ;;  %v295_v39 = vsub.f32 %v40_v1, %v86_v37  ;;  %v177_v36 = vstv %s214_s30 }
  0x32   :  { %v91_v40 = vmul.f32 %v293_v38, %v293_v38  ;;  %v92_v41 = vmul.f32 %v295_v39, %v295_v39 }
  0x34   :  { %v95_v42 = vcombine.high %v91_v40, %v91_v40  ;;  %v96_v43 = vcombine.high %v92_v41, %v92_v41  ;;  %v99_v44 = vsel %vm47_vm0, %v91_v40, 0.0  ;;  %v113_v45 = vsel %vm47_vm0, %v92_v41, 0.0 }
  0x35   :  { %v100_v46 = vrot.slane %v99_v44, 4  ;;  %v114_v47 = vrot.slane %v113_v45, 4  ;;  %v175_v40 = vsel %vm172_vm4, %v174_v31, %v168_v30 }
  0x36   :  { %v106_v48 = vsel %vm47_vm0, %v95_v42, 0.0  ;;  %v120_v49 = vsel %vm47_vm0, %v96_v43, 0.0  ;;  %v178_v43 = vsel %vm172_vm4, %v177_v36, %v171_v35 }
  0x37   :  { %v101_v50 = vadd.f32 %v100_v46, %v99_v44  ;;  %v107_v51 = vrot.slane %v106_v48, 4  ;;  %v115_v52 = vadd.f32 %v114_v47, %v113_v45  ;;  %v121_v53 = vrot.slane %v120_v49, 4 }
  0x39   :  { %v102_v54 = vrot.slane %v101_v50, 2  ;;  %v108_v55 = vadd.f32 %v107_v51, %v106_v48  ;;  %v116_v56 = vrot.slane %v115_v52, 2  ;;  %v122_v57 = vadd.f32 %v121_v53, %v120_v49 }
  0x3b   :  { %v103_v58 = vadd.f32 %v102_v54, %v101_v50  ;;  %v109_v59 = vrot.slane %v108_v55, 2  ;;  %v117_v60 = vadd.f32 %v116_v56, %v115_v52  ;;  %v123_v61 = vrot.slane %v122_v57, 2 }
  0x3d   :  { %v104_v62 = vrot.slane %v103_v58, 1  ;;  %v110_v63 = vadd.f32 %v109_v59, %v108_v55  ;;  %v118_v0 = vrot.slane %v117_v60, 1  ;;  %v124_v1 = vadd.f32 %v123_v61, %v122_v57 }
  0x3f   :  { %v105_v3 = vadd.f32 %v104_v62, %v103_v58  ;;  %v111_v4 = vrot.slane %v110_v63, 1  ;;  %v119_v5 = vadd.f32 %v118_v0, %v117_v60  ;;  %v125_v6 = vrot.slane %v124_v1, 1 }
  0x41   :  { %v112_v7 = vadd.f32 %v111_v4, %v110_v63  ;;  %v126_v8 = vadd.f32 %v125_v6, %v124_v1  ;;  %v127_v9 = vmul.f32 0.25, %v105_v3  ;;  %v129_v10 = vmul.f32 0.25, %v119_v5 }
  0x43   :  { %v128_v12 = vmul.f32 0.25, %v112_v7  ;;  %v130_v13 = vmul.f32 0.25, %v126_v8  ;;  %v131_v14 = vadd.f32 1e-05, %v127_v9  ;;  %v133_v15 = vadd.f32 1e-05, %v129_v10 }
  0x45   :  { %v132_v16 = vadd.f32 1e-05, %v128_v12  ;;  %v134_v17 = vadd.f32 1e-05, %v130_v13  ;;  %219 = vrsqrt.f32 %v131_v14 }
  0x46   :  { %221 = vrsqrt.f32 %v133_v15 }
  0x47   :  { %223 = vrsqrt.f32 %v132_v16 }
  0x48   :  { %225 = vrsqrt.f32 %v134_v17 }
  0x4f   :  { %v220_v26 = vpop.eup %219 }
  0x50   :  { %v222_v29 = vpop.eup %221 }
  0x51   :  { %v224_v32 = vpop.eup %223 }
  0x52   :  { %v226_v33 = vpop.eup %225  ;;  %v143_v34 = vcombine.low %v220_v26, %v224_v32 }
  0x53   :  { %v144_v37 = vcombine.low %v222_v29, %v226_v33 }
  0x54   :  { %v147_v41 = vmul.f32 %v143_v34, %v293_v38 }
  0x55   :  { %v148_v42 = vmul.f32 %v144_v37, %v295_v39 }
  0x56   :  { %v181_v44 = vcombine.high %v147_v41, %v147_v41  ;;  %v185_v45 = vmul.f32 %v175_v40, %v147_v41 }
  0x57   :  { %v182_v46 = vcombine.high %v148_v42, %v148_v42  ;;  %v187_v47 = vmul.f32 %v175_v40, %v148_v42 }
  0x58   :  { %v186_v48 = vmul.f32 %v181_v44, %v175_v40  ;;  %v189_v49 = vadd.f32 %v185_v45, %v178_v43 }
  0x59   :  { %v188_v50 = vmul.f32 %v182_v46, %v175_v40  ;;  %v191_v51 = vadd.f32 %v187_v47, %v178_v43 }
  0x5a   :  { %v190_v52 = vadd.f32 %v186_v48, %v178_v43 }
  0x5b   :  { %v192_v53 = vadd.f32 %v188_v50, %v178_v43 }
  0x5c   :  { %v197_v54 = vcombine.low %v189_v49, %v190_v52 }
  0x5d   :  { %v198_v55 = vcombine.low %v191_v51, %v192_v53 }
  0x5e   :  { %201 = vst [vmem:[%s316_s3] sm:$0xff] %v197_v54 }
  0x5f   :  { %202 = vst [vmem:[%s316_s3 + $0x8] sm:$0xff] %v198_v55 }
  0x60   :  { %207 = vsyncpa [#allocation3], 1 }
  0x61   :  { %208 = vsyncpa [#allocation5], 1 }

</bundles_post_ra>
